<compile_context>
chip_gen: v7x
topology: tpu7x:2x2x1
jax: 0.10.0
libtpu: 0.0.40
codegen_flags: <defaults>
</compile_context>

<pallas_src>
import numpy as np
import jax
import jax.numpy as jnp
from jax.experimental import pallas as pl
from jax.experimental.pallas import tpu as pltpu


def _round_up(x, m):
    return ((x + m - 1) // m) * m


def time_mapping_kernel(ts_ref, w_ref, wt_ref, o_ref):
    # ts_ref: [TB, Tp] f32 ; w_ref: [1, Tp] f32 ; wt_ref: [Tp, Tp] bf16 (= padded W.T)
    harmonic = jnp.sin(ts_ref[...] * w_ref[...])                  # VPU/EUP, f32
    out = jnp.dot(harmonic.astype(jnp.bfloat16), wt_ref[...],
                  preferred_element_type=jnp.float32)             # MXU, bf16 in / f32 acc
    o_ref[...] = (out + 1.0).astype(o_ref.dtype)


def time_mapping(ts, w_pad, wt_pad_bf16, *, time_dim, row_tile=1024):
    """ts: [B, time_dim] f32.  w_pad: [1, Tp] f32.  wt_pad_bf16: [Tp, Tp] bf16 (padded W.T)."""
    B, T = ts.shape
    assert T == time_dim
    Tp = w_pad.shape[-1]

    # Row tile: multiple of 8 sublanes, capped so double-buffered in+out tiles
    # (2 * 2 * TB * Tp * 4B) stay far under the default scoped VMEM limit
    # (~4 MiB at TB=1024, Tp=256) -- safe on v7x's smaller VMEM too.
    tb = min(row_tile, _round_up(B, 8))
    Bp = _round_up(B, tb)

    ts_p = jnp.pad(ts, ((0, Bp - B), (0, Tp - T)))

    out_p = pl.pallas_call(
        time_mapping_kernel,
        out_shape=jax.ShapeDtypeStruct((Bp, Tp), jnp.float32),
        grid_spec=pl.GridSpec(
            grid=(Bp // tb,),
            in_specs=[
                pl.BlockSpec((tb, Tp), lambda i: (i, 0)),   # ts tile (pipelined)
                pl.BlockSpec((1, Tp), lambda i: (0, 0)),    # w, resident
                pl.BlockSpec((Tp, Tp), lambda i: (0, 0)),   # W.T, resident
            ],
            out_specs=pl.BlockSpec((tb, Tp), lambda i: (i, 0)),
        ),
        compiler_params=pltpu.CompilerParams(
            dimension_semantics=("parallel",)),
    )(ts_p, w_pad, wt_pad_bf16)

    return out_p[:B, :T]


def make_params(time_dim=172):
    Tp = _round_up(time_dim, 128)

    # Fixed (non-learned) frequency vector, exactly as in the PyTorch __init__,
    # zero-padded on the lane axis so padded columns give sin(0) = 0.
    base = int(np.sqrt(time_dim))
    w = np.array([base ** (-(i - 1) / base) for i in range(1, time_dim + 1)],
                 dtype=np.float32)
    w_pad = np.zeros((1, Tp), dtype=np.float32)
    w_pad[0, :time_dim] = w

    # Deterministic synthetic Linear weight (torch layout: [out_features, in_features]).
    key = jax.random.PRNGKey(42)
    bound = 1.0 / np.sqrt(time_dim)
    lin_weight = jax.random.uniform(key, (time_dim, time_dim),
                                    minval=-bound, maxval=bound,
                                    dtype=jnp.float32)

    # Pre-transpose, zero-pad to [Tp, Tp] and cast to bf16 once.
    wt_pad = jnp.zeros((Tp, Tp), dtype=jnp.float32)
    wt_pad = wt_pad.at[:time_dim, :time_dim].set(lin_weight.T)
    wt_pad_bf16 = wt_pad.astype(jnp.bfloat16)

    return jnp.asarray(w), jnp.asarray(w_pad), lin_weight, wt_pad_bf16


def reference(ts, w, lin_weight):
    harmonic = jnp.sin(ts * w.reshape(1, -1))
    return harmonic @ lin_weight.T + 1.0


if __name__ == "__main__":
    time_dim = 172   # module default
    batch = 8

    w, w_pad, lin_weight, wt_pad_bf16 = make_params(time_dim)

    key = jax.random.PRNGKey(0)
    ts = jax.random.uniform(key, (batch, time_dim),
                            minval=0.0, maxval=100.0, dtype=jnp.float32)

    out = time_mapping(ts, w_pad, wt_pad_bf16, time_dim=time_dim)
    out = jax.block_until_ready(out)

    ref = reference(ts, w, lin_weight)
    # bf16 matmul operands with f32 accumulation -> loosened tolerance.
    np.testing.assert_allclose(np.asarray(out), np.asarray(ref),
                               rtol=2e-2, atol=2e-2)
    print("KERNEL_OK")
</pallas_src>

<mosaic_0001>
module attributes {stable_mosaic.version = 11 : i64} {
  func.func @time_mapping_kernel(%arg0: i32, %arg1: memref<8x256xf32, #tpu.memory_space<vmem>>, %arg2: memref<1x256xf32, #tpu.memory_space<vmem>>, %arg3: memref<256x256xbf16, #tpu.memory_space<vmem>>, %arg4: memref<8x256xf32, #tpu.memory_space<vmem>>) attributes {dimension_semantics = [#tpu.dimension_semantics<parallel>], iteration_bounds = array<i64: 1>, scalar_prefetch = 0 : i64, scratch_operands = 0 : i64, tpu.core_type = #tpu.core_type<tc>, window_params = [{transform_indices = @transform_0, window_bounds = array<i64: 8, 256>}, {pipeline_mode = #tpu.pipeline_mode<synchronous>, transform_indices = @transform_1, window_bounds = array<i64: 1, 256>}, {pipeline_mode = #tpu.pipeline_mode<synchronous>, transform_indices = @transform_2, window_bounds = array<i64: 256, 256>}, {transform_indices = @transform_3, window_bounds = array<i64: 8, 256>}]} {
    %c0 = arith.constant 0 : index
    %c0_0 = arith.constant 0 : index
    %0 = vector.load %arg1[%c0, %c0_0] : memref<8x256xf32, #tpu.memory_space<vmem>>, vector<8x256xf32>
    %c0_1 = arith.constant 0 : index
    %c0_2 = arith.constant 0 : index
    %1 = vector.load %arg2[%c0_1, %c0_2] : memref<1x256xf32, #tpu.memory_space<vmem>>, vector<1x256xf32>
    %2 = vector.broadcast %1 : vector<1x256xf32> to vector<8x256xf32>
    %3 = arith.mulf %0, %2 : vector<8x256xf32>
    %4 = math.sin %3 : vector<8x256xf32>
    %5 = arith.truncf %4 : vector<8x256xf32> to vector<8x256xbf16>
    %c0_3 = arith.constant 0 : index
    %c0_4 = arith.constant 0 : index
    %6 = vector.load %arg3[%c0_3, %c0_4] : memref<256x256xbf16, #tpu.memory_space<vmem>>, vector<256x256xbf16>
    %cst = arith.constant dense<0.000000e+00> : vector<8x256xf32>
    %7 = tpu.matmul %5, %6, %cst {dimension_numbers = #tpu.dot_dimension_numbers<[1], [0], [0], [1], [0, 0, 1, 1], [], []>} : vector<8x256xbf16>, vector<256x256xbf16>, vector<8x256xf32> -> vector<8x256xf32>
    %cst_5 = arith.constant 1.000000e+00 : f32
    %8 = vector.broadcast %cst_5 : f32 to vector<8x256xf32>
    %9 = arith.addf %7, %8 : vector<8x256xf32>
    %c0_6 = arith.constant 0 : index
    %c0_7 = arith.constant 0 : index
    %10 = vector.load %arg4[%c0_6, %c0_7] : memref<8x256xf32, #tpu.memory_space<vmem>>, vector<8x256xf32>
    tpu.vector_store %arg4[%c0_6, %c0_7], %9 {strides = array<i32>} : memref<8x256xf32, #tpu.memory_space<vmem>>, vector<8x256xf32>,
    return
  }
  func.func @transform_0(%arg0: i32) -> (i32, i32) {
    %c0_i32 = arith.constant 0 : i32
    %c0_i32_0 = arith.constant 0 : i32
    return %arg0, %c0_i32 : i32, i32
  }
  func.func @transform_1(%arg0: i32) -> (i32, i32) {
    %c0_i32 = arith.constant 0 : i32
    %c0_i32_0 = arith.constant 0 : i32
    %c0_i32_1 = arith.constant 0 : i32
    return %c0_i32, %c0_i32_0 : i32, i32
  }
  func.func @transform_2(%arg0: i32) -> (i32, i32) {
    %c0_i32 = arith.constant 0 : i32
    %c0_i32_0 = arith.constant 0 : i32
    %c0_i32_1 = arith.constant 0 : i32
    return %c0_i32, %c0_i32_0 : i32, i32
  }
  func.func @transform_3(%arg0: i32) -> (i32, i32) {
    %c0_i32 = arith.constant 0 : i32
    %c0_i32_0 = arith.constant 0 : i32
    return %arg0, %c0_i32 : i32, i32
  }
}

</mosaic_0001>

<bundles_post_ra>
// kernel: tpu_custom_call.1
= control target key start
LH: loop header
LB: loop body
LE: loop exit
PB: predicated region body
PF: predicated region fallthrough
CT: control target
= control target key end

     0   :  { %8 = vsyncpa [#allocation3], 0  ;;  %s872_s0 = inlined_call_operand.hbm [shape: f32[8,256], index: 0, kind: input, shape index: {}]   ;;  %s873_s1 = inlined_call_operand.vmem [shape: f32[1,256], index: 1, kind: input, shape index: {}]   ;;  %s874_s2 = inlined_call_operand.hbm [shape: bf16[256,256], index: 2, kind: input, shape index: {}]   ;;  %s875_s3 = inlined_call_operand.hbm [shape: f32[8,256], index: 3, kind: output, shape index: {}]  }
   0x1   :  { %9 = vsyncpa [#allocation6], 0 }
   0x2   :  { %10 = vsyncpa [#allocation4], 0  ;;  %s705_s12 = smov [#allocation2]   ;;  %s706_s14 = smov [#allocation5]  }
   0x3   :  { %s17_s13 = sshll.u32 %s705_s12, 4  ;;  %s28_s15 = sshll.u32 %s706_s14, 4  ;;  %s18_s13 = int_to_ptr.vmem [resolvable:$true] %s17_s13  ;;  %s736_s15 = int_to_ptr.vmem [resolvable:$true] %s28_s15 }
   0x4   :  { %s633_s18 = scalar_lea.hbm %s872_s0, 256 }
   0x5   :  { %p634_p0 = scmp.ne.s32.totalorder %s872_s0, %s633_s18  ;;  %p637_p1 = scmp.lt.u32.totalorder %s633_s18, %s872_s0 }
   0x7   :  { %p639_p2 = pnand %p637_p1, %p634_p0 }
   0x9   :  { %642 = shalt.err (!%p639_p2)
}
   0xa   :  { %s643_s23 = scalar_lea.vmem %s18_s13, 256  ;;  %p648_p4 = scmp.lt.s32.totalorder %s18_s13, %s18_s13 }
   0xb   :  { %p644_p3 = scmp.ne.s32.totalorder %s18_s13, %s643_s23  ;;  %p649_p5 = scmp.lt.s32.totalorder %s643_s23, %s643_s23 }
   0xd   :  { %p650_p6 = por %p649_p5, %p648_p4 }
   0xf   :  { %p651_p7 = pnand %p650_p6, %p644_p3 }
  0x11   :  { %654 = shalt.err (!%p651_p7)
}
  0x12   :  { %20 = dma.hbm_to_vmem [thread:$0]  %s872_s0, 256, %s18_s13, [#allocation3]  }
  0x13   :  { %s655_s28 = scalar_lea.hbm %s874_s2, 4096 }
  0x14   :  { %p656_p8 = scmp.ne.s32.totalorder %s874_s2, %s655_s28  ;;  %p659_p9 = scmp.lt.u32.totalorder %s655_s28, %s874_s2 }
  0x16   :  { %p661_p10 = pnand %p659_p9, %p656_p8 }
  0x18   :  { %664 = shalt.err (!%p661_p10)
}
  0x19   :  { %s665_s6 = scalar_lea.vmem %s736_s15, 4096  ;;  %p670_p12 = scmp.lt.s32.totalorder %s736_s15, %s736_s15 }
  0x1a   :  { %p666_p11 = scmp.ne.s32.totalorder %s736_s15, %s665_s6  ;;  %p671_p13 = scmp.lt.s32.totalorder %s665_s6, %s665_s6 }
  0x1c   :  { %p672_p0 = por %p671_p13, %p670_p12 }
  0x1e   :  { %p673_p1 = pnand %p672_p0, %p666_p11 }
  0x20   :  { %676 = shalt.err (!%p673_p1)
}
  0x21   :  { %s707_s0 = smov 128   ;;  %s708_s7 = smov 8  }
  0x22   :  { %34 = dma.hbm_to_vmem [thread:$0]  %s874_s2, 4096, %s736_s15, [#allocation6], %s707_s0, %s707_s0, %s708_s7  }
  0x23   :  { %699 = dma.done.wait [#allocation3], 256  }
  0x24   :  { %700 = vsyncadd [#allocation3], 4294967040 }
  0x25   :  { %701 = dma.done.wait [#allocation6], 4096  }
  0x26   :  { %702 = vsyncadd [#allocation6], 4294963200  ;;  %v577_v0 = vld [vmem:[#allocation5 + $0x4] ss:$8 sps:$4 sm:$0xff]   ;;  %v579_v1 = vld [vmem:[#allocation5] ss:$8 sps:$4 sm:$0xff]   ;;  %v45_v7 = vlaneseq }
  0x27   :  { %459 = vmatprep.subr.bf16.mxu0 %v577_v0  ;;  %v580_v2 = vld [vmem:[#allocation5 + $0x14] ss:$8 sps:$4 sm:$0xff]   ;;  %v582_v3 = vld [vmem:[#allocation5 + $0x10] ss:$8 sps:$4 sm:$0xff]   ;;  %v583_v4 = vld [vmem:[#allocation5 + $0x24] ss:$8 sps:$4 sm:$0xff]  }
  0x28   :  { %460 = vmatpush1.bf16.msra.mxu0 %v579_v1  ;;  %v585_v5 = vld [vmem:[#allocation5 + $0x20] ss:$8 sps:$4 sm:$0xff]   ;;  %v586_v6 = vld [vmem:[#allocation5 + $0x34] ss:$8 sps:$4 sm:$0xff]   ;;  %v588_v8 = vld [vmem:[#allocation5 + $0x30] ss:$8 sps:$4 sm:$0xff]  }
  0x29   :  { %461 = vmatprep.subr.bf16.mxu0 %v580_v2  ;;  %v589_v9 = vld [vmem:[#allocation5 + $0x44] ss:$8 sps:$4 sm:$0xff]   ;;  %v46_v10 = vshrl.u32 %v45_v7, 7  ;;  %v591_v11 = vld [vmem:[#allocation5 + $0x40] ss:$8 sps:$4 sm:$0xff]   ;;  %v42_v17 = vld [vmem:[#allocation2 + $0x8] sm:$0xff] }
  0x2a   :  { %v592_v12 = vld [vmem:[#allocation5 + $0x54] ss:$8 sps:$4 sm:$0xff]   ;;  %v594_v15 = vld [vmem:[#allocation5 + $0x50] ss:$8 sps:$4 sm:$0xff]   ;;  %v595_v16 = vld [vmem:[#allocation5 + $0x64] ss:$8 sps:$4 sm:$0xff]  }
  0x2b   :  { %v47_v13 = vsub.s32 0, %v46_v10  ;;  %v51_v14 = vsub.s32 1, %v46_v10  ;;  %v43_v18 = vld [vmem:[%s873_s1] sm:$0x3]  ;;  %v597_v22 = vld [vmem:[#allocation5 + $0x60] ss:$8 sps:$4 sm:$0xff]  }
  0x2c   :  { %462 = vmatpush1.bf16.msra.mxu0 %v582_v3  ;;  %v41_v21 = vld [vmem:[#allocation2] sm:$0xff]  ;;  %v601_v31 = vld [vmem:[#allocation5 + $0x84] ss:$8 sps:$4 sm:$0xff]   ;;  %v603_v37 = vld [vmem:[#allocation5 + $0x80] ss:$8 sps:$4 sm:$0xff]   ;;  %s715_s1 = smov [#allocation7]  }
  0x2d   :  { %463 = vmatprep.subr.bf16.mxu0 %v583_v4  ;;  %v48_v19 = vrot.slane %v43_v18, %v47_v13  ;;  %v52_v20 = vrot.slane %v43_v18, %v51_v14  ;;  %v598_v23 = vld [vmem:[#allocation5 + $0x74] ss:$8 sps:$4 sm:$0xff]   ;;  %v600_v28 = vld [vmem:[#allocation5 + $0x70] ss:$8 sps:$4 sm:$0xff]   ;;  %v607_v46 = vld [vmem:[#allocation5 + $0xa4] ss:$8 sps:$4 sm:$0xff]  }
  0x2e   :  { %v604_v39 = vld [vmem:[#allocation5 + $0x94] ss:$8 sps:$4 sm:$0xff]   ;;  %v606_v44 = vld [vmem:[#allocation5 + $0x90] ss:$8 sps:$4 sm:$0xff]   ;;  %v709_v54 = vmov 683565275  }
  0x2f   :  { %v770_v24 = vmul.f32 %v52_v20, %v42_v17  ;;  %v772_v25 = vmul.f32 %v48_v19, %v41_v21  ;;  %v710_v56 = vmov 2475754826   ;;  %v711_v58 = vmov 2131351028   ;;  %v609_v60 = vld [vmem:[#allocation5 + $0xa0] ss:$8 sps:$4 sm:$0xff]  }
  0x30   :  { %464 = vmatpush1.bf16.msra.mxu0 %v585_v5  ;;  %v712_v61 = vmov 2102212464   ;;  %v713_v63 = vmov 920167782   ;;  %v610_v2 = vld [vmem:[#allocation5 + $0xb4] ss:$8 sps:$4 sm:$0xff]  }
  0x31   :  { %465 = vmatprep.subr.bf16.mxu0 %v586_v6  ;;  %v161_v26 = vand.u32 2147483647, %v770_v24  ;;  %v164_v27 = vand.u32 2139095040, %v770_v24  ;;  %v57_v29 = vand.u32 2147483647, %v772_v25  ;;  %v60_v30 = vand.u32 2139095040, %v772_v25 }
  0x32   :  { %v612_v14 = vld [vmem:[#allocation5 + $0xb0] ss:$8 sps:$4 sm:$0xff]   ;;  %v613_v18 = vld [vmem:[#allocation5 + $0xc4] ss:$8 sps:$4 sm:$0xff]   ;;  %vm163_vm14 = vcmp.lt.s32.totalorder %v770_v24, 0  ;;  %s508_s11 = sshll.u32 %s715_s1, 4  ;;  %s509_s11 = int_to_ptr.vmem [resolvable:$true] %s508_s11 }
  0x33   :  { %v165_v32 = vshrl.u32 %v164_v27, 23  ;;  %v168_v33 = vand.u32 8388607, %v161_v26  ;;  %v61_v34 = vshrl.u32 %v60_v30, 23  ;;  %v64_v35 = vand.u32 8388607, %v57_v29  ;;  %p682_p3 = scmp.lt.s32.totalorder %s509_s11, %s509_s11 }
  0x34   :  { %466 = vmatpush1.bf16.msra.mxu0 %v588_v8  ;;  %v714_v8 = vmov 1326507024   ;;  %vm162_vm15 = vcmp.le.f32.partialorder %v161_v26, 0.7853982  ;;  %s677_s12 = scalar_lea.vmem %s509_s11, 256 }
  0x35   :  { %467 = vmatprep.subr.bf16.mxu0 %v589_v9  ;;  %v522_v36 = vadd.s32 4294967169, %v165_v32  ;;  %v518_v38 = vadd.s32 4294967169, %v61_v34  ;;  %v169_v41 = vor.u32 8388608, %v168_v33  ;;  %v65_v42 = vor.u32 8388608, %v64_v35  ;;  %v615_v35 = vld [vmem:[#allocation5 + $0xc0] ss:$8 sps:$4 sm:$0xff]   ;;  %p678_p2 = scmp.ne.s32.totalorder %s509_s11, %s677_s12  ;;  %p683_p4 = scmp.lt.s32.totalorder %s677_s12, %s677_s12 }
  0x37   :  { %v171_v40 = vadd.s32 1, %v522_v36  ;;  %v67_v43 = vadd.s32 1, %v518_v38  ;;  %v782_v50 = vshll.u32 %v169_v41, 8  ;;  %v786_v52 = vshll.u32 %v65_v42, 8  ;;  %p684_p5 = por %p683_p4, %p682_p3 }
  0x38   :  { %468 = vmatpush1.bf16.msra.mxu0 %v591_v11 }
  0x39   :  { %469 = vmatprep.subr.bf16.mxu0 %v592_v12  ;;  %vm172_vm0 = vcmp.gt.s32.totalorder %v171_v40, 0  ;;  %vm68_vm1 = vcmp.gt.s32.totalorder %v67_v43, 0  ;;  %p685_p6 = pnand %p684_p5, %p678_p2 }
  0x3a   :  { %v173_v45 = vsel %vm172_vm0, %v171_v40, 0  ;;  %v69_v49 = vsel %vm68_vm1, %v67_v43, 0  ;;  %v616_v40 = vld [vmem:[#allocation5 + $0xd4] ss:$8 sps:$4 sm:$0xff]   ;;  %vm59_vm0 = vcmp.lt.s32.totalorder %v772_v25, 0 }
  0x3b   :  { %v174_v47 = vshrl.u32 %v173_v45, 5  ;;  %v175_v48 = vand.u32 31, %v173_v45  ;;  %v784_v51 = vand.u32 31, %v69_v49  ;;  %v788_v1 = vshrl.u32 %v69_v49, 5 }
  0x3c   :  { %470 = vmatpush1.bf16.msra.mxu0 %v594_v15  ;;  %vm58_vm1 = vcmp.le.f32.partialorder %v57_v29, 0.7853982 }
  0x3d   :  { %471 = vmatprep.subr.bf16.mxu0 %v595_v16  ;;  %v176_v53 = vsub.s32 32, %v175_v48  ;;  %v178_v55 = vshll.u32 %v709_v54, %v175_v48  ;;  %v181_v57 = vshll.u32 %v710_v56, %v175_v48  ;;  %v184_v59 = vshll.u32 %v711_v58, %v175_v48 }
  0x3e   :  { %v187_v62 = vshll.u32 %v712_v61, %v175_v48  ;;  %v190_v0 = vshll.u32 %v713_v63, %v175_v48  ;;  %vm193_vm2 = vcmp.lt.s32.totalorder %v174_v47, 1  ;;  %vm194_vm3 = vcmp.lt.s32.totalorder %v174_v47, 2 }
  0x3f   :  { %v177_v3 = vshrl.u32 %v709_v54, %v176_v53  ;;  %v179_v4 = vshrl.u32 %v710_v56, %v176_v53  ;;  %v182_v5 = vshrl.u32 %v711_v58, %v176_v53  ;;  %v185_v6 = vshrl.u32 %v712_v61, %v176_v53 }
  0x40   :  { %472 = vmatpush1.bf16.msra.mxu0 %v597_v22  ;;  %v188_v7 = vshrl.u32 %v713_v63, %v176_v53  ;;  %v191_v9 = vshrl.u32 %v714_v8, %v176_v53  ;;  %vm196_vm4 = vcmp.lt.s32.totalorder %v174_v47, 4  ;;  %v72_v13 = vsub.s32 32, %v784_v51 }
  0x41   :  { %473 = vmatprep.subr.bf16.mxu0 %v598_v23  ;;  %v180_v10 = vor.u32 %v179_v4, %v178_v55  ;;  %v183_v11 = vor.u32 %v182_v5, %v181_v57  ;;  %v186_v12 = vor.u32 %v185_v6, %v184_v59  ;;  %vm195_vm5 = vcmp.lt.s32.totalorder %v174_v47, 3  ;;  %v621_v4 = vld [vmem:[#allocation5 + $0xe0] ss:$8 sps:$4 sm:$0xff]  }
  0x42   :  { %v189_v15 = vor.u32 %v188_v7, %v187_v62  ;;  %v192_v16 = vor.u32 %v191_v9, %v190_v0  ;;  %v74_v17 = vshll.u32 %v709_v54, %v784_v51  ;;  %v77_v30 = vshll.u32 %v710_v56, %v784_v51  ;;  %v622_v9 = vld [vmem:[#allocation5 + $0xf4] ss:$8 sps:$4 sm:$0xff]  }
  0x43   :  { %v197_v19 = vsel %vm193_vm2, %v177_v3, %v180_v10  ;;  %v198_v20 = vsel %vm196_vm4, %v186_v12, 2102212464  ;;  %v201_v21 = vsel %vm193_vm2, %v180_v10, %v183_v11  ;;  %v205_v22 = vsel %vm193_vm2, %v183_v11, %v186_v12 }
  0x44   :  { %474 = vmatpush1.bf16.msra.mxu0 %v600_v28  ;;  %v199_v23 = vsel %vm195_vm5, %v183_v11, %v198_v20  ;;  %v202_v27 = vsel %vm196_vm4, %v189_v15, 920167782  ;;  %v206_v28 = vsel %vm196_vm4, %v192_v16, 1326507024  ;;  %v73_v33 = vshrl.u32 %v709_v54, %v72_v13 }
  0x45   :  { %475 = vmatprep.subr.bf16.mxu0 %v601_v31  ;;  %v203_v31 = vsel %vm195_vm5, %v186_v12, %v202_v27  ;;  %v207_v32 = vsel %vm195_vm5, %v189_v15, %v206_v28  ;;  %v75_v34 = vshrl.u32 %v710_v56, %v72_v13  ;;  %v200_v36 = vsel %vm194_vm3, %v197_v19, %v199_v23  ;;  %v618_v56 = vld [vmem:[#allocation5 + $0xd0] ss:$8 sps:$4 sm:$0xff]  }
  0x46   :  { %v208_v38 = vsel %vm194_vm3, %v205_v22, %v207_v32  ;;  %v80_v48 = vshll.u32 %v711_v58, %v784_v51  ;;  %v81_v49 = vshrl.u32 %v712_v61, %v72_v13  ;;  %v83_v47 = vshll.u32 %v712_v61, %v784_v51  ;;  %v624_v19 = vld [vmem:[#allocation5 + $0xf0] ss:$8 sps:$4 sm:$0xff]  }
  0x47   :  { %v803_v41 = vmul.u32.u64.low %v782_v50, %v208_v38  ;;  %v804_v42 = vmul.u32.u64.high %v782_v50, %v208_v38, %v803_v41  ;;  %v76_v45 = vor.u32 %v75_v34, %v74_v17  ;;  %v84_v53 = vshrl.u32 %v713_v63, %v72_v13 }
  0x48   :  { %476 = vmatpush1.bf16.msra.mxu0 %v603_v37  ;;  %v204_v37 = vsel %vm194_vm3, %v201_v21, %v203_v31  ;;  %v86_v54 = vshll.u32 %v713_v63, %v784_v51  ;;  %v87_v55 = vshrl.u32 %v714_v8, %v72_v13  ;;  %v216_v57 = vmul.u32 %v782_v50, %v200_v36 }
  0x49   :  { %477 = vmatprep.subr.bf16.mxu0 %v604_v39  ;;  %v78_v39 = vshrl.u32 %v711_v58, %v72_v13  ;;  %v82_v59 = vor.u32 %v81_v49, %v80_v48  ;;  %vm89_vm6 = vcmp.lt.s32.totalorder %v788_v1, 1  ;;  %vm90_vm7 = vcmp.lt.s32.totalorder %v788_v1, 2 }
  0x4a   :  { %v85_v61 = vor.u32 %v84_v53, %v83_v47  ;;  %vm91_vm9 = vcmp.lt.s32.totalorder %v788_v1, 3  ;;  %v88_v51 = vor.u32 %v87_v55, %v86_v54  ;;  %vm92_vm10 = vcmp.lt.s32.totalorder %v788_v1, 4 }
  0x4b   :  { %v93_v62 = vsel %vm89_vm6, %v73_v33, %v76_v45  ;;  %v94_v0 = vsel %vm92_vm10, %v82_v59, 2102212464  ;;  %vm253_vm5 = vweird.f32 %v770_v24 }
  0x4c   :  { %478 = vmatpush1.bf16.msra.mxu0 %v606_v44  ;;  %v807_v43 = vmul.u32.u64.low %v782_v50, %v204_v37  ;;  %v808_v44 = vmul.u32.u64.high %v782_v50, %v204_v37, %v807_v43  ;;  %v102_v8 = vsel %vm92_vm10, %v88_v51, 1326507024 }
  0x4d   :  { %479 = vmatprep.subr.bf16.mxu0 %v607_v46  ;;  %v79_v46 = vor.u32 %v78_v39, %v77_v30  ;;  %v103_v12 = vsel %vm91_vm9, %v85_v61, %v102_v8 }
  0x4e   :  { %vm218_vm8 = vc.u32 %v804_v42, %v807_v43  ;;  %v219_v58 = vadd.s32 1, %v808_v44 }
  0x4f   :  { %v97_v50 = vsel %vm89_vm6, %v76_v45, %v79_v46  ;;  %v101_v3 = vsel %vm89_vm6, %v79_v46, %v82_v59  ;;  %v95_v6 = vsel %vm91_vm9, %v79_v46, %v94_v0 }
  0x50   :  { %480 = vmatpush1.bf16.msra.mxu0 %v609_v60  ;;  %v619_v60 = vld [vmem:[#allocation5 + $0xe4] ss:$8 sps:$4 sm:$0xff]   ;;  %v220_v63 = vsel %vm218_vm8, %v219_v58, %v808_v44  ;;  %v96_v10 = vsel %vm90_vm7, %v93_v62, %v95_v6 }
  0x51   :  { %481 = vmatprep.subr.bf16.mxu0 %v610_v2  ;;  %v98_v2 = vsel %vm92_vm10, %v85_v61, 920167782  ;;  %v221_v5 = vadd.s32 %v220_v63, %v216_v57  ;;  %v112_v21 = vmul.u32 %v786_v52, %v96_v10 }
  0x52   :  { %v99_v7 = vsel %vm91_vm9, %v82_v59, %v98_v2  ;;  %vm149_vm9 = vweird.f32 %v772_v25 }
  0x53   :  { %v100_v11 = vsel %vm90_vm7, %v97_v50, %v99_v7  ;;  %v222_v13 = vadd.s32 536870912, %v221_v5 }
  0x54   :  { %482 = vmatpush1.bf16.msra.mxu0 %v612_v14  ;;  %v104_v14 = vsel %vm90_vm7, %v101_v3, %v103_v12  ;;  %v836_v15 = vmul.u32.u64.low %v786_v52, %v100_v11  ;;  %v837_v16 = vmul.u32.u64.high %v786_v52, %v100_v11, %v836_v15 }
  0x55   :  { %483 = vmatprep.subr.bf16.mxu0 %v613_v18  ;;  %v840_v17 = vmul.u32.u64.low %v786_v52, %v104_v14  ;;  %v841_v18 = vmul.u32.u64.high %v786_v52, %v104_v14, %v840_v17  ;;  %v223_v20 = vshrl.u32 %v222_v13, 30  ;;  %v217_v52 = vadd.s32 %v807_v43, %v804_v42 }
  0x56   :  { %v115_v23 = vadd.s32 1, %v837_v16 }
  0x57   :  { %v224_v22 = vshll.u32 %v223_v20, 30  ;;  %vm114_vm11 = vc.u32 %v841_v18, %v836_v15  ;;  %v113_v57 = vadd.s32 %v836_v15, %v841_v18  ;;  %v247_v42 = vsub.s32 4, %v223_v20 }
  0x58   :  { %484 = vmatpush1.bf16.msra.mxu0 %v615_v35  ;;  %v116_v27 = vsel %vm114_vm11, %v115_v23, %v837_v16 }
  0x59   :  { %485 = vmatprep.subr.bf16.mxu0 %v616_v40  ;;  %v225_v1 = vsub.s32 %v221_v5, %v224_v22  ;;  %v117_v28 = vadd.s32 %v116_v27, %v112_v21  ;;  %v248_v0 = vsel %vm163_vm14, %v247_v42, %v223_v20 }
  0x5a   :  { %v250_v6 = vsel %vm162_vm15, 0, %v248_v0 }
  0x5b   :  { %v227_v30 = vsub.s32 0, %v225_v1  ;;  %v118_v31 = vadd.s32 536870912, %v117_v28  ;;  %v254_v11 = vadd.s32 3, %v250_v6 }
  0x5c   :  { %486 = vmatpush1.bf16.msra.mxu0 %v618_v56 }
  0x5d   :  { %487 = vmatprep.subr.bf16.mxu0 %v619_v60  ;;  %v523_v32 = vmin.u32 %v227_v30, %v225_v1  ;;  %v119_v33 = vshrl.u32 %v118_v31, 30  ;;  %v255_v14 = vand.u32 3, %v254_v11 }
  0x5f   :  { %v229_v34 = vclz %v523_v32  ;;  %v120_v35 = vshll.u32 %v119_v33, 30  ;;  %v143_v10 = vsub.s32 4, %v119_v33  ;;  %vm260_vm2 = vcmp.eq.s32.totalorder %v255_v14, 2 }
  0x60   :  { %488 = vmatpush1.bf16.msra.mxu0 %v621_v4  ;;  %vm257_vm3 = vcmp.eq.s32.totalorder %v255_v14, 0  ;;  %vm256_vm4 = vcmp.lt.s32.totalorder %v255_v14, 2 }
  0x61   :  { %489 = vmatprep.subr.bf16.mxu0 %v622_v9  ;;  %v524_v36 = vadd.s32 4294967294, %v229_v34  ;;  %v121_v37 = vsub.s32 %v117_v28, %v120_v35  ;;  %v144_v13 = vsel %vm59_vm0, %v143_v10, %v119_v33 }
  0x62   :  { %v146_v17 = vsel %vm58_vm1, 0, %v144_v13 }
  0x63   :  { %vm525_vm12 = vcmp.lt.s32.totalorder %v524_v36, 0  ;;  %v123_v39 = vsub.s32 0, %v121_v37  ;;  %v150_v21 = vadd.s32 3, %v146_v17 }
  0x64   :  { %490 = vmatpush1.bf16.msra.mxu0 %v624_v19  ;;  %v232_v38 = vsel %vm525_vm12, 0, %v524_v36 }
  0x65   :  { %v233_v40 = vsub.s32 32, %v232_v38  ;;  %v234_v41 = vshll.u32 %v225_v1, %v232_v38  ;;  %v237_v44 = vsub.s32 4294967266, %v232_v38  ;;  %v519_v45 = vmin.u32 %v123_v39, %v121_v37 }
  0x66   :  { %v151_v27 = vand.u32 3, %v150_v21 }
  0x67   :  { %v235_v46 = vshrl.u32 %v217_v52, %v233_v40  ;;  %v238_v48 = vadd.s32 127, %v237_v44  ;;  %v125_v49 = vclz %v519_v45 }
  0x68   :  { %vm156_vm6 = vcmp.eq.s32.totalorder %v151_v27, 2  ;;  %vm153_vm7 = vcmp.eq.s32.totalorder %v151_v27, 0  ;;  %vm152_vm8 = vcmp.lt.s32.totalorder %v151_v27, 2 }
  0x69   :  { %v236_v47 = vor.u32 %v235_v46, %v234_v41  ;;  %v239_v53 = vshll.u32 %v238_v48, 23  ;;  %v520_v54 = vadd.s32 4294967294, %v125_v49 }
  0x6b   :  { %v240_v55 = vor.u32 4788187, %v239_v53  ;;  %v243_v56 = vcvt.s32.f32 %v236_v47  ;;  %vm521_vm13 = vcmp.lt.s32.totalorder %v520_v54, 0 }
  0x6c   :  { %v128_v43 = vsel %vm521_vm13, 0, %v520_v54 }
  0x6d   :  { %v241_v59 = vand.u32 2147483647, %v240_v55  ;;  %v129_v60 = vsub.s32 32, %v128_v43  ;;  %v130_v58 = vshll.u32 %v121_v37, %v128_v43  ;;  %v133_v61 = vsub.s32 4294967266, %v128_v43 }
  0x6f   :  { %v244_v51 = vmul.f32 %v243_v56, %v241_v59  ;;  %v131_v62 = vshrl.u32 %v113_v57, %v129_v60  ;;  %v134_v50 = vadd.s32 127, %v133_v61 }
  0x71   :  { %v245_v63 = vxor.u32 2147483648, %v244_v51  ;;  %v132_v2 = vor.u32 %v131_v62, %v130_v58  ;;  %v135_v3 = vshll.u32 %v134_v50, 23 }
  0x73   :  { %v246_v4 = vsel %vm163_vm14, %v245_v63, %v244_v51  ;;  %v136_v7 = vor.u32 4788187, %v135_v3  ;;  %v139_v8 = vcvt.s32.f32 %v132_v2 }
  0x74   :  { %v249_v5 = vsel %vm162_vm15, %v770_v24, %v246_v4 }
  0x75   :  { %625 = vcosq.f32 %v249_v5  ;;  %v137_v9 = vand.u32 2147483647, %v136_v7 }
  0x76   :  { %627 = vsinq.f32 %v249_v5 }
  0x77   :  { %v140_v12 = vmul.f32 %v139_v8, %v137_v9 }
  0x79   :  { %v141_v26 = vxor.u32 2147483648, %v140_v12 }
  0x7b   :  { %v142_v15 = vsel %vm59_vm0, %v141_v26, %v140_v12 }
  0x7c   :  { %v145_v16 = vsel %vm58_vm1, %v772_v25, %v142_v15 }
  0x7d   :  { %629 = vcosq.f32 %v145_v16 }
  0x7e   :  { %631 = vsinq.f32 %v145_v16 }
  0x7f   :  { %v626_v18 = vpop.eup %625 }
  0x80   :  { %v628_v19 = vpop.eup %627  ;;  %v261_v20 = vxor.u32 2147483648, %v626_v18 }
  0x81   :  { %v258_v22 = vxor.u32 2147483648, %v628_v19 }
  0x82   :  { %v262_v29 = vsel %vm260_vm2, %v261_v20, %v628_v19 }
  0x83   :  { %v259_v23 = vsel %vm257_vm3, %v626_v18, %v258_v22 }
  0x84   :  { %v263_v1 = vsel %vm256_vm4, %v259_v23, %v262_v29 }
  0x85   :  { %v264_v28 = vsel %vm253_vm5, nan, %v263_v1 }
  0x86   :  { %v266_v30 = vpack.c.bf16 %v264_v28, %v264_v28 }
  0x87   :  { %v630_v31 = vpop.eup %629 }
  0x88   :  { %491 = vmatprep.mubr.bf16.mxu0 %v266_v30  ;;  %v632_v32 = vpop.eup %631  ;;  %v157_v33 = vxor.u32 2147483648, %v630_v31 }
  0x89   :  { %v154_v34 = vxor.u32 2147483648, %v632_v32 }
  0x8a   :  { %v158_v35 = vsel %vm156_vm6, %v157_v33, %v632_v32 }
  0x8b   :  { %v155_v36 = vsel %vm153_vm7, %v630_v31, %v154_v34 }
  0x8c   :  { %v159_v37 = vsel %vm152_vm8, %v155_v36, %v158_v35 }
  0x8d   :  { %v160_v24 = vsel %vm149_vm9, nan, %v159_v37 }
  0x8e   :  { %v265_v52 = vpack.c.bf16 %v160_v24, %v160_v24 }
  0x90   :  { %492 = vmatmul.mubr.bf16.vlgmr.msra.gmra.mrb[0].mxu0 %v265_v52 }
 0x163   :  { %v493_v38 = vpop.f32.mrb[0].mxu0 }
 0x164   :  { %v494_v39 = vadd.f32 1.0, %v493_v38  ;;  %v495_v40 = vpop.f32.mrb[1].mxu0 }
 0x165   :  { %v496_v41 = vadd.f32 1.0, %v495_v40  ;;  %v497_v44 = vpop.f32.mrb[2].mxu0 }
 0x166   :  { %500 = vst [vmem:[#allocation7] sm:$0xff] %v494_v39  ;;  %v498_v45 = vpop.f32.mrb[3].mxu0 }
 0x167   :  { %501 = vst [vmem:[#allocation7 + $0x8] sm:$0xff] %v496_v41 }
 0x168   :  { %688 = shalt.err (!%p685_p6)
}
 0x169   :  { %s689_s15 = scalar_lea.hbm %s875_s3, 256 }
 0x16a   :  { %p690_p7 = scmp.ne.s32.totalorder %s875_s3, %s689_s15  ;;  %p693_p8 = scmp.lt.u32.totalorder %s689_s15, %s875_s3 }
 0x16c   :  { %p695_p9 = pnand %p693_p8, %p690_p7 }
 0x16e   :  { %698 = shalt.err (!%p695_p9)
}
 0x16f   :  { %511 = dma.vmem_to_hbm [thread:$0]  %s509_s11, 256, %s875_s3, [#allocation4]  }
 0x170   :  { %703 = dma.done.wait [#allocation4], 256  }
 0x171   :  { %704 = vsyncadd [#allocation4], 4294967040 }
 0x172   :  { %515 = vsyncpa [#allocation3], 1 }
 0x173   :  { %516 = vsyncpa [#allocation6], 1 }
 0x174   :  { %517 = vsyncpa [#allocation4], 1 }

</bundles_post_ra>
